<compile_context>
chip_gen: v5e
topology: v5e:2x2
jax: 0.10.0
libtpu: 0.0.40
codegen_flags: <defaults>
</compile_context>

<pallas_src>
import math
import functools
import numpy as np
import jax
import jax.numpy as jnp
from jax.experimental import pallas as pl
from jax.experimental.pallas import tpu as pltpu


# -----------------------------------------------------------------------------
# Parameter construction (mirrors creak_layer_mask / calculate_mask_index)
# -----------------------------------------------------------------------------
def calculate_mask_index(kernel_length_now, largest_kernel_length):
    right = math.ceil((largest_kernel_length - 1) / 2) - math.ceil((kernel_length_now - 1) / 2)
    left = largest_kernel_length - kernel_length_now - right
    return left, left + kernel_length_now


def create_mask(n_out, n_in, kernel_length_now, largest_kernel_length):
    l, r = calculate_mask_index(kernel_length_now, largest_kernel_length)
    mask = np.ones((n_out, n_in, largest_kernel_length), dtype=np.float32)
    mask[:, :, :l] = 0.0
    mask[:, :, r:] = 0.0
    return mask


def create_layer_params(layer_parameter_list, key):
    """Deterministic re-implementation of creak_layer_mask (PyTorch Conv1d default init)."""
    k_max = layer_parameter_list[-1][-1]
    masks, weights, biases = [], [], []
    for (cin, cout, k) in layer_parameter_list:
        key, wk, bk = jax.random.split(key, 3)
        bound = 1.0 / math.sqrt(cin * k)          # PyTorch Conv1d default init bound
        w = jax.random.uniform(wk, (cout, cin, k), jnp.float32, -bound, bound)
        b = jax.random.uniform(bk, (cout,), jnp.float32, -bound, bound)
        l, r = calculate_mask_index(k, k_max)
        big_w = np.zeros((cout, cin, k_max), dtype=np.float32)
        big_w[:, :, l:r] = np.asarray(w)
        weights.append(big_w)
        biases.append(np.asarray(b))
        masks.append(create_mask(cout, cin, k, k_max))
    mask = jnp.asarray(np.concatenate(masks, axis=0))        # (C_out, C_in, K)
    weight = jnp.asarray(np.concatenate(weights, axis=0))    # (C_out, C_in, K)
    bias = jnp.asarray(np.concatenate(biases, axis=0))       # (C_out,)
    return mask, weight, bias


# -----------------------------------------------------------------------------
# Shared in-kernel conv tile: im2col (sublane-padded) + single MXU dot
# -----------------------------------------------------------------------------
def _conv_tile(x, w, *, K, L, pad_l, C_pad):
    # x: (C_in, M) lane-dense tile; lanes index (batch-in-tile, position), position minor.
    # w: (C_out, K*C_pad), columns ordered [tap, in_channel(+zero pad rows)].
    C_in, m = x.shape
    if C_pad > C_in:
        # Pad once to an 8-sublane multiple so every per-tap window (and their
        # concatenation) lands on (8,128) tile boundaries -- no repacking.
        x = jnp.concatenate([x, jnp.zeros((C_pad - C_in, m), x.dtype)], axis=0)

    # lane position within each length-L sequence segment (same for all sublanes)
    j = jax.lax.broadcasted_iota(jnp.int32, (1, m), 1) % L

    windows = []
    for k in range(K):                     # static unroll over taps
        s = k - pad_l                      # tap offset relative to output position
        if s == 0:
            windows.append(x)
            continue
        # shifted[p] = x[(p + s) mod M]; out-of-sequence lanes masked to zero,
        # which implements the asymmetric conv padding with no HBM pad copy.
        if m % 128 == 0:
            shifted = pltpu.roll(x, (-s) % m, axis=1)   # single XLU lane rotate
        else:
            shifted = jnp.roll(x, -s, axis=1)           # short/unaligned tiles
        lo, hi = max(0, -s), min(L, L - s)
        windows.append(jnp.where((j >= lo) & (j < hi), shifted, 0.0))

    stacked = jnp.concatenate(windows, axis=0)           # (K*C_pad, M), tile-aligned
    # Single MXU matmul with contraction depth K*C_pad (zero pad rows are free).
    return jnp.dot(w, stacked, preferred_element_type=jnp.float32)


# -----------------------------------------------------------------------------
# Pallas kernels
# -----------------------------------------------------------------------------
def conv_stats_kernel(x_ref, w_ref, sum_ref, m2_ref, *, K, L, pad_l, C_pad):
    # Stats-only pass: no conv output is written to HBM.  Emits per-tile
    # per-channel sum and CENTERED sum-of-squares (for Chan's combine formula).
    y = _conv_tile(x_ref[...], w_ref[...], K=K, L=L, pad_l=pad_l, C_pad=C_pad)
    m = y.shape[1]
    s = jnp.sum(y, axis=1, keepdims=True)                # (C_out, 1)
    d = y - s * (1.0 / m)
    sum_ref[0] = s
    m2_ref[0] = jnp.sum(d * d, axis=1, keepdims=True)    # (C_out, 1)


def conv_bn_relu_kernel(x_ref, w_ref, scale_ref, shift_ref, o_ref, *, K, L, pad_l, C_pad):
    # Recompute the conv (cheap vs HBM) and fuse folded BN scale/shift + ReLU
    # into the only large HBM write of the whole layer.
    y = _conv_tile(x_ref[...], w_ref[...], K=K, L=L, pad_l=pad_l, C_pad=C_pad)
    o_ref[...] = jnp.maximum(y * scale_ref[...] + shift_ref[...], 0.0)


# -----------------------------------------------------------------------------
# Tiling heuristics (VMEM-capacity aware, megacore friendly)
# -----------------------------------------------------------------------------
def _vmem_capacity_bytes():
    default = 64 << 20            # conservative (v7x per-TensorCore VMEM)
    try:
        fn = getattr(pltpu, "get_tpu_info", None)
        if fn is None:
            return default
        cap = getattr(fn(), "vmem_capacity_bytes", None)
        return int(cap) if cap else default
    except Exception:
        return default


def _choose_batch_tile(n, l, c_in, c_pad, c_out, k, budget_bytes):
    """Largest batch tile NT (divisor of N); when the batch is split the lane
    width NT*L stays 128-aligned.  Prefers >= 2 grid steps (v7x megacore)."""
    bytes_per_lane = 4 * (2 * c_in + (k + 1) * c_pad + 3 * c_out)   # f32, ~2x buffered I/O
    divisors = sorted((d for d in range(1, n + 1) if n % d == 0), reverse=True)
    fits = lambda nt: nt * l * bytes_per_lane <= budget_bytes
    aligned = lambda nt: (nt * l) % 128 == 0
    for nt in divisors:                       # 1) split: >=2 steps, aligned, in budget
        if nt < n and aligned(nt) and fits(nt):
            return nt
    if fits(n):                               # 2) whole batch in one step
        return n
    for nt in divisors:                       # 3) aligned split even if over budget
        if nt < n and aligned(nt):
            return nt
    # 4) last resort (lane axis is never split; relies on raised vmem limit)
    return n


# -----------------------------------------------------------------------------
# Wrapper
# -----------------------------------------------------------------------------
def os_cnn_layer_forward(x, weight_mask, conv_w, conv_b, gamma, beta, eps=1e-5):
    # NOTE: conv_b is intentionally unused: training-mode BatchNorm normalizes
    # with batch statistics, which are exactly invariant to a per-channel
    # constant shift, so the bias cancels in ReLU(BN(conv + b)).
    del conv_b
    N, C_in, L = x.shape
    C_out, _, K = conv_w.shape
    pad_l = (K - 1) // 2
    C_pad = ((C_in + 7) // 8) * 8

    # Masked conv weight folded into one (C_out, K*C_pad) contraction matrix whose
    # column order matches the kernel's window stack ([tap, padded in_channel]).
    w_t = jnp.transpose(conv_w * weight_mask, (0, 2, 1))            # (C_out, K, C_in)
    if C_pad > C_in:
        w_t = jnp.pad(w_t, ((0, 0), (0, 0), (0, C_pad - C_in)))
    w2 = w_t.reshape(C_out, K * C_pad)

    # Lane-dense layout plumbing: channels on sublanes, (batch, position) on lanes.
    x_cm = jnp.transpose(x, (1, 0, 2)).reshape(C_in, N * L)

    cap = _vmem_capacity_bytes()
    budget = max(cap // 5, 4 << 20)                   # per-grid-step block budget
    vmem_limit = int(cap * 3 // 4)
    NT = _choose_batch_tile(N, L, C_in, C_pad, C_out, K, budget)
    T = N // NT
    M = NT * L

    cparams = pltpu.CompilerParams(dimension_semantics=("parallel",),
                                   vmem_limit_bytes=vmem_limit)

    # --- pass 1: stats only (conv output never touches HBM) -------------------
    sums, m2s = pl.pallas_call(
        functools.partial(conv_stats_kernel, K=K, L=L, pad_l=pad_l, C_pad=C_pad),
        out_shape=(
            jax.ShapeDtypeStruct((T, C_out, 1), jnp.float32),
            jax.ShapeDtypeStruct((T, C_out, 1), jnp.float32),
        ),
        grid=(T,),
        in_specs=[
            pl.BlockSpec((C_in, M), lambda t: (0, t)),
            pl.BlockSpec((C_out, K * C_pad), lambda t: (0, 0)),
        ],
        out_specs=(
            pl.BlockSpec((1, C_out, 1), lambda t: (t, 0, 0)),
            pl.BlockSpec((1, C_out, 1), lambda t: (t, 0, 0)),
        ),
        compiler_params=cparams,
    )(x_cm, w2)

    # Combine per-tile centered stats with Chan's parallel formula (tiny (T,C_out)
    # math -> XLA), then fold mean / inv_std / gamma / beta into scale + shift.
    sums = sums[:, :, 0]                               # (T, C_out)
    m2s = m2s[:, :, 0]                                 # (T, C_out)
    count_t = float(M)
    count = float(N * L)
    mean_t = sums / count_t
    mean = jnp.sum(sums, axis=0) / count               # (C_out,)
    m2 = jnp.sum(m2s, axis=0) + count_t * jnp.sum((mean_t - mean[None, :]) ** 2, axis=0)
    var = jnp.maximum(m2 / count, 0.0)                 # biased var, like PyTorch BN
    inv_std = jax.lax.rsqrt(var + eps)
    scale = (gamma * inv_std).reshape(C_out, 1)
    shift = (beta - mean * gamma * inv_std).reshape(C_out, 1)

    # --- pass 2: recompute conv, normalize + ReLU, single HBM write ------------
    out_cm = pl.pallas_call(
        functools.partial(conv_bn_relu_kernel, K=K, L=L, pad_l=pad_l, C_pad=C_pad),
        out_shape=jax.ShapeDtypeStruct((C_out, N * L), jnp.float32),
        grid=(T,),
        in_specs=[
            pl.BlockSpec((C_in, M), lambda t: (0, t)),
            pl.BlockSpec((C_out, K * C_pad), lambda t: (0, 0)),
            pl.BlockSpec((C_out, 1), lambda t: (0, 0)),
            pl.BlockSpec((C_out, 1), lambda t: (0, 0)),
        ],
        out_specs=pl.BlockSpec((C_out, M), lambda t: (0, t)),
        compiler_params=cparams,
    )(x_cm, w2, scale, shift)

    # Back to the module's (N, C_out, L) layout.  (For L % 128 == 0 the kernel
    # could write (NT, C_out, L) blocks directly and skip this transpose.)
    return jnp.transpose(out_cm.reshape(C_out, N, L), (1, 0, 2))


# -----------------------------------------------------------------------------
# Pure-JAX reference (same semantics) for a correctness check
# -----------------------------------------------------------------------------
def reference_forward(x, weight_mask, conv_w, conv_b, gamma, beta, eps=1e-5):
    C_out, _, K = conv_w.shape
    w = conv_w * weight_mask
    pad_l, pad_r = (K - 1) // 2, K // 2
    xpad = jnp.pad(x, ((0, 0), (0, 0), (pad_l, pad_r)))
    y = jax.lax.conv_general_dilated(
        xpad, w, window_strides=(1,), padding='VALID',
        dimension_numbers=('NCH', 'OIH', 'NCH')) + conv_b.reshape(1, -1, 1)
    mean = jnp.mean(y, axis=(0, 2), keepdims=True)
    var = jnp.var(y, axis=(0, 2), keepdims=True)   # biased, like PyTorch BN normalization
    y_hat = (y - mean) / jnp.sqrt(var + eps)
    return jnp.maximum(y_hat * gamma.reshape(1, -1, 1) + beta.reshape(1, -1, 1), 0.0)


if __name__ == "__main__":
    # layer_parameters: list of (in_channels, out_channels, kernel_size)
    layer_parameters = [(4, 8, 3), (4, 8, 5), (4, 8, 7)]   # -> C_in=4, C_out=24, K=7

    key = jax.random.PRNGKey(0)
    key, pkey, gkey, bkey, xkey1, xkey2 = jax.random.split(key, 6)
    weight_mask, conv_w, conv_b = create_layer_params(layer_parameters, pkey)
    C_out = conv_w.shape[0]
    gamma = 1.0 + 0.1 * jax.random.normal(gkey, (C_out,), jnp.float32)
    beta = 0.1 * jax.random.normal(bkey, (C_out,), jnp.float32)

    fwd = jax.jit(os_cnn_layer_forward)

    # small module-default-ish shape (short L, single grid step)
    x1 = jax.random.normal(xkey1, (2, 4, 16), jnp.float32)          # (N, C_in, L)
    out1 = jax.block_until_ready(fwd(x1, weight_mask, conv_w, conv_b, gamma, beta))
    ref1 = reference_forward(x1, weight_mask, conv_w, conv_b, gamma, beta)
    assert out1.shape == (2, C_out, 16)
    assert np.allclose(np.asarray(out1), np.asarray(ref1), atol=1e-3, rtol=1e-3)

    # lane-aligned shape exercising the multi-tile grid, pltpu.roll path and
    # the Chan cross-tile statistics combine
    x2 = jax.random.normal(xkey2, (4, 4, 128), jnp.float32)
    out2 = jax.block_until_ready(fwd(x2, weight_mask, conv_w, conv_b, gamma, beta))
    ref2 = reference_forward(x2, weight_mask, conv_w, conv_b, gamma, beta)
    assert out2.shape == (4, C_out, 128)
    assert np.allclose(np.asarray(out2), np.asarray(ref2), atol=1e-3, rtol=1e-3)

    print("KERNEL_OK")
</pallas_src>

<mosaic_0001>
module attributes {stable_mosaic.version = 11 : i64} {
  func.func @conv_stats_kernel(%arg0: i32, %arg1: memref<4x32xf32, #tpu.memory_space<vmem>>, %arg2: memref<24x56xf32, #tpu.memory_space<vmem>>, %arg3: memref<1x24x1xf32, #tpu.memory_space<vmem>>, %arg4: memref<1x24x1xf32, #tpu.memory_space<vmem>>) attributes {dimension_semantics = [#tpu.dimension_semantics<parallel>], iteration_bounds = array<i64: 1>, scalar_prefetch = 0 : i64, scratch_operands = 0 : i64, tpu.core_type = #tpu.core_type<tc>, window_params = [{transform_indices = @transform_0, window_bounds = array<i64: 4, 32>}, {pipeline_mode = #tpu.pipeline_mode<synchronous>, transform_indices = @transform_1, window_bounds = array<i64: 24, 56>}, {transform_indices = @transform_2, window_bounds = array<i64: 1, 24, 1>}, {transform_indices = @transform_3, window_bounds = array<i64: 1, 24, 1>}]} {
    %c0 = arith.constant 0 : index
    %c0_0 = arith.constant 0 : index
    %0 = vector.load %arg1[%c0, %c0_0] : memref<4x32xf32, #tpu.memory_space<vmem>>, vector<4x32xf32>
    %c0_1 = arith.constant 0 : index
    %c0_2 = arith.constant 0 : index
    %1 = vector.load %arg2[%c0_1, %c0_2] : memref<24x56xf32, #tpu.memory_space<vmem>>, vector<24x56xf32>
    %cst = arith.constant 0.000000e+00 : f32
    %2 = vector.broadcast %cst : f32 to vector<4x32xf32>
    %3 = tpu.concatenate %0, %2 in 0 : vector<4x32xf32>, vector<4x32xf32> -> vector<8x32xf32>
    %4 = tpu.iota {dimensions = array<i32: 1>} : vector<1x32xi32>
    %c16_i32 = arith.constant 16 : i32
    %c0_i32 = arith.constant 0 : i32
    %5 = arith.cmpi eq, %c16_i32, %c0_i32 : i32
    %c1_i32 = arith.constant 1 : i32
    %6 = arith.select %5, %c1_i32, %c16_i32 : i32
    %7 = vector.broadcast %6 : i32 to vector<1x32xi32>
    %8 = arith.remsi %4, %7 : vector<1x32xi32>
    %c0_i32_3 = arith.constant 0 : i32
    %9 = vector.broadcast %c0_i32_3 : i32 to vector<1x32xi32>
    %10 = arith.cmpi ne, %8, %9 : vector<1x32xi32>
    %c0_i32_4 = arith.constant 0 : i32
    %11 = vector.broadcast %c0_i32_4 : i32 to vector<1x32xi32>
    %12 = arith.cmpi slt, %8, %11 : vector<1x32xi32>
    %c0_i32_5 = arith.constant 0 : i32
    %13 = arith.cmpi slt, %6, %c0_i32_5 : i32
    %14 = vector.broadcast %13 : i1 to vector<1x32xi1>
    %15 = vector.broadcast %14 : vector<1x32xi1> to vector<1x32xi1>
    %16 = arith.xori %12, %15 : vector<1x32xi1>
    %17 = arith.andi %16, %10 : vector<1x32xi1>
    %18 = vector.broadcast %6 : i32 to vector<1x32xi32>
    %19 = arith.addi %8, %18 : vector<1x32xi32>
    %20 = arith.select %17, %19, %8 : vector<1x32xi1>, vector<1x32xi32>
    %21 = vector.extract_strided_slice %3 {offsets = [0, 29], sizes = [8, 3], strides = [1, 1]} : vector<8x32xf32> to vector<8x3xf32>
    %22 = vector.extract_strided_slice %3 {offsets = [0, 0], sizes = [8, 29], strides = [1, 1]} : vector<8x32xf32> to vector<8x29xf32>
    %23 = tpu.concatenate %21, %22 in 1 : vector<8x3xf32>, vector<8x29xf32> -> vector<8x32xf32>
    %c3_i32 = arith.constant 3 : i32
    %24 = vector.broadcast %c3_i32 : i32 to vector<1x32xi32>
    %25 = arith.cmpi sge, %20, %24 : vector<1x32xi32>
    %c16_i32_6 = arith.constant 16 : i32
    %26 = vector.broadcast %c16_i32_6 : i32 to vector<1x32xi32>
    %27 = arith.cmpi slt, %20, %26 : vector<1x32xi32>
    %28 = arith.andi %25, %27 : vector<1x32xi1>
    %cst_7 = arith.constant 0.000000e+00 : f32
    %29 = vector.shape_cast %28 : vector<1x32xi1> to vector<1x32xi1>
    %30 = vector.broadcast %29 : vector<1x32xi1> to vector<8x32xi1>
    %31 = vector.broadcast %cst_7 : f32 to vector<8x32xf32>
    %32 = arith.select %30, %23, %31 : vector<8x32xi1>, vector<8x32xf32>
    %33 = vector.extract_strided_slice %3 {offsets = [0, 30], sizes = [8, 2], strides = [1, 1]} : vector<8x32xf32> to vector<8x2xf32>
    %34 = vector.extract_strided_slice %3 {offsets = [0, 0], sizes = [8, 30], strides = [1, 1]} : vector<8x32xf32> to vector<8x30xf32>
    %35 = tpu.concatenate %33, %34 in 1 : vector<8x2xf32>, vector<8x30xf32> -> vector<8x32xf32>
    %c2_i32 = arith.constant 2 : i32
    %36 = vector.broadcast %c2_i32 : i32 to vector<1x32xi32>
    %37 = arith.cmpi sge, %20, %36 : vector<1x32xi32>
    %c16_i32_8 = arith.constant 16 : i32
    %38 = vector.broadcast %c16_i32_8 : i32 to vector<1x32xi32>
    %39 = arith.cmpi slt, %20, %38 : vector<1x32xi32>
    %40 = arith.andi %37, %39 : vector<1x32xi1>
    %cst_9 = arith.constant 0.000000e+00 : f32
    %41 = vector.shape_cast %40 : vector<1x32xi1> to vector<1x32xi1>
    %42 = vector.broadcast %41 : vector<1x32xi1> to vector<8x32xi1>
    %43 = vector.broadcast %cst_9 : f32 to vector<8x32xf32>
    %44 = arith.select %42, %35, %43 : vector<8x32xi1>, vector<8x32xf32>
    %45 = vector.extract_strided_slice %3 {offsets = [0, 31], sizes = [8, 1], strides = [1, 1]} : vector<8x32xf32> to vector<8x1xf32>
    %46 = vector.extract_strided_slice %3 {offsets = [0, 0], sizes = [8, 31], strides = [1, 1]} : vector<8x32xf32> to vector<8x31xf32>
    %47 = tpu.concatenate %45, %46 in 1 : vector<8x1xf32>, vector<8x31xf32> -> vector<8x32xf32>
    %c1_i32_10 = arith.constant 1 : i32
    %48 = vector.broadcast %c1_i32_10 : i32 to vector<1x32xi32>
    %49 = arith.cmpi sge, %20, %48 : vector<1x32xi32>
    %c16_i32_11 = arith.constant 16 : i32
    %50 = vector.broadcast %c16_i32_11 : i32 to vector<1x32xi32>
    %51 = arith.cmpi slt, %20, %50 : vector<1x32xi32>
    %52 = arith.andi %49, %51 : vector<1x32xi1>
    %cst_12 = arith.constant 0.000000e+00 : f32
    %53 = vector.shape_cast %52 : vector<1x32xi1> to vector<1x32xi1>
    %54 = vector.broadcast %53 : vector<1x32xi1> to vector<8x32xi1>
    %55 = vector.broadcast %cst_12 : f32 to vector<8x32xf32>
    %56 = arith.select %54, %47, %55 : vector<8x32xi1>, vector<8x32xf32>
    %57 = vector.extract_strided_slice %3 {offsets = [0, 1], sizes = [8, 31], strides = [1, 1]} : vector<8x32xf32> to vector<8x31xf32>
    %58 = vector.extract_strided_slice %3 {offsets = [0, 0], sizes = [8, 1], strides = [1, 1]} : vector<8x32xf32> to vector<8x1xf32>
    %59 = tpu.concatenate %57, %58 in 1 : vector<8x31xf32>, vector<8x1xf32> -> vector<8x32xf32>
    %c0_i32_13 = arith.constant 0 : i32
    %60 = vector.broadcast %c0_i32_13 : i32 to vector<1x32xi32>
    %61 = arith.cmpi sge, %20, %60 : vector<1x32xi32>
    %c15_i32 = arith.constant 15 : i32
    %62 = vector.broadcast %c15_i32 : i32 to vector<1x32xi32>
    %63 = arith.cmpi slt, %20, %62 : vector<1x32xi32>
    %64 = arith.andi %61, %63 : vector<1x32xi1>
    %cst_14 = arith.constant 0.000000e+00 : f32
    %65 = vector.shape_cast %64 : vector<1x32xi1> to vector<1x32xi1>
    %66 = vector.broadcast %65 : vector<1x32xi1> to vector<8x32xi1>
    %67 = vector.broadcast %cst_14 : f32 to vector<8x32xf32>
    %68 = arith.select %66, %59, %67 : vector<8x32xi1>, vector<8x32xf32>
    %69 = vector.extract_strided_slice %3 {offsets = [0, 2], sizes = [8, 30], strides = [1, 1]} : vector<8x32xf32> to vector<8x30xf32>
    %70 = vector.extract_strided_slice %3 {offsets = [0, 0], sizes = [8, 2], strides = [1, 1]} : vector<8x32xf32> to vector<8x2xf32>
    %71 = tpu.concatenate %69, %70 in 1 : vector<8x30xf32>, vector<8x2xf32> -> vector<8x32xf32>
    %c0_i32_15 = arith.constant 0 : i32
    %72 = vector.broadcast %c0_i32_15 : i32 to vector<1x32xi32>
    %73 = arith.cmpi sge, %20, %72 : vector<1x32xi32>
    %c14_i32 = arith.constant 14 : i32
    %74 = vector.broadcast %c14_i32 : i32 to vector<1x32xi32>
    %75 = arith.cmpi slt, %20, %74 : vector<1x32xi32>
    %76 = arith.andi %73, %75 : vector<1x32xi1>
    %cst_16 = arith.constant 0.000000e+00 : f32
    %77 = vector.shape_cast %76 : vector<1x32xi1> to vector<1x32xi1>
    %78 = vector.broadcast %77 : vector<1x32xi1> to vector<8x32xi1>
    %79 = vector.broadcast %cst_16 : f32 to vector<8x32xf32>
    %80 = arith.select %78, %71, %79 : vector<8x32xi1>, vector<8x32xf32>
    %81 = vector.extract_strided_slice %3 {offsets = [0, 3], sizes = [8, 29], strides = [1, 1]} : vector<8x32xf32> to vector<8x29xf32>
    %82 = vector.extract_strided_slice %3 {offsets = [0, 0], sizes = [8, 3], strides = [1, 1]} : vector<8x32xf32> to vector<8x3xf32>
    %83 = tpu.concatenate %81, %82 in 1 : vector<8x29xf32>, vector<8x3xf32> -> vector<8x32xf32>
    %c0_i32_17 = arith.constant 0 : i32
    %84 = vector.broadcast %c0_i32_17 : i32 to vector<1x32xi32>
    %85 = arith.cmpi sge, %20, %84 : vector<1x32xi32>
    %c13_i32 = arith.constant 13 : i32
    %86 = vector.broadcast %c13_i32 : i32 to vector<1x32xi32>
    %87 = arith.cmpi slt, %20, %86 : vector<1x32xi32>
    %88 = arith.andi %85, %87 : vector<1x32xi1>
    %cst_18 = arith.constant 0.000000e+00 : f32
    %89 = vector.shape_cast %88 : vector<1x32xi1> to vector<1x32xi1>
    %90 = vector.broadcast %89 : vector<1x32xi1> to vector<8x32xi1>
    %91 = vector.broadcast %cst_18 : f32 to vector<8x32xf32>
    %92 = arith.select %90, %83, %91 : vector<8x32xi1>, vector<8x32xf32>
    %93 = tpu.concatenate %32, %44, %56, %3, %68, %80, %92 in 0 : vector<8x32xf32>, vector<8x32xf32>, vector<8x32xf32>, vector<8x32xf32>, vector<8x32xf32>, vector<8x32xf32>, vector<8x32xf32> -> vector<56x32xf32>
    %cst_19 = arith.constant dense<0.000000e+00> : vector<24x32xf32>
    %94 = tpu.matmul %1, %93, %cst_19 {dimension_numbers = #tpu.dot_dimension_numbers<[1], [0], [0], [1], [0, 0, 1, 1], [], []>} : vector<24x56xf32>, vector<56x32xf32>, vector<24x32xf32> -> vector<24x32xf32>
    %cst_20 = arith.constant dense<0.000000e+00> : vector<24xf32>
    %95 = vector.multi_reduction <add>, %94, %cst_20 [1] : vector<24x32xf32> to vector<24xf32>
    %96 = vector.shape_cast %95 : vector<24xf32> to vector<24x1xf32>
    %cst_21 = arith.constant 3.125000e-02 : f32
    %97 = vector.broadcast %cst_21 : f32 to vector<24x1xf32>
    %98 = arith.mulf %96, %97 : vector<24x1xf32>
    %99 = vector.broadcast %98 : vector<24x1xf32> to vector<24x32xf32>
    %100 = arith.subf %94, %99 : vector<24x32xf32>
    %c0_22 = arith.constant 0 : index
    %c0_23 = arith.constant 0 : index
    %c0_24 = arith.constant 0 : index
    %101 = vector.load %arg3[%c0_22, %c0_23, %c0_24] : memref<1x24x1xf32, #tpu.memory_space<vmem>>, vector<1x24x1xf32>
    %102 = vector.shape_cast %101 : vector<1x24x1xf32> to vector<24x1xf32>
    %103 = vector.shape_cast %96 : vector<24x1xf32> to vector<1x24x1xf32>
    tpu.vector_store %arg3[%c0_22, %c0_23, %c0_24], %103 {strides = array<i32>} : memref<1x24x1xf32, #tpu.memory_space<vmem>>, vector<1x24x1xf32>,
    %104 = arith.mulf %100, %100 : vector<24x32xf32>
    %cst_25 = arith.constant dense<0.000000e+00> : vector<24xf32>
    %105 = vector.multi_reduction <add>, %104, %cst_25 [1] : vector<24x32xf32> to vector<24xf32>
    %106 = vector.shape_cast %105 : vector<24xf32> to vector<24x1xf32>
    %c0_26 = arith.constant 0 : index
    %c0_27 = arith.constant 0 : index
    %c0_28 = arith.constant 0 : index
    %107 = vector.load %arg4[%c0_26, %c0_27, %c0_28] : memref<1x24x1xf32, #tpu.memory_space<vmem>>, vector<1x24x1xf32>
    %108 = vector.shape_cast %107 : vector<1x24x1xf32> to vector<24x1xf32>
    %109 = vector.shape_cast %106 : vector<24x1xf32> to vector<1x24x1xf32>
    tpu.vector_store %arg4[%c0_26, %c0_27, %c0_28], %109 {strides = array<i32>} : memref<1x24x1xf32, #tpu.memory_space<vmem>>, vector<1x24x1xf32>,
    return
  }
  func.func @transform_0(%arg0: i32) -> (i32, i32) {
    %c0_i32 = arith.constant 0 : i32
    %c0_i32_0 = arith.constant 0 : i32
    return %c0_i32, %arg0 : i32, i32
  }
  func.func @transform_1(%arg0: i32) -> (i32, i32) {
    %c0_i32 = arith.constant 0 : i32
    %c0_i32_0 = arith.constant 0 : i32
    %c0_i32_1 = arith.constant 0 : i32
    return %c0_i32, %c0_i32_0 : i32, i32
  }
  func.func @transform_2(%arg0: i32) -> (i32, i32, i32) {
    %c0_i32 = arith.constant 0 : i32
    %c0_i32_0 = arith.constant 0 : i32
    %c0_i32_1 = arith.constant 0 : i32
    return %arg0, %c0_i32, %c0_i32_0 : i32, i32, i32
  }
  func.func @transform_3(%arg0: i32) -> (i32, i32, i32) {
    %c0_i32 = arith.constant 0 : i32
    %c0_i32_0 = arith.constant 0 : i32
    %c0_i32_1 = arith.constant 0 : i32
    return %arg0, %c0_i32, %c0_i32_0 : i32, i32, i32
  }
}

module attributes {stable_mosaic.version = 11 : i64} {
  func.func @conv_bn_relu_kernel(%arg0: i32, %arg1: memref<4x32xf32, #tpu.memory_space<vmem>>, %arg2: memref<24x56xf32, #tpu.memory_space<vmem>>, %arg3: memref<24x1xf32, #tpu.memory_space<vmem>>, %arg4: memref<24x1xf32, #tpu.memory_space<vmem>>, %arg5: memref<24x32xf32, #tpu.memory_space<vmem>>) attributes {dimension_semantics = [#tpu.dimension_semantics<parallel>], iteration_bounds = array<i64: 1>, scalar_prefetch = 0 : i64, scratch_operands = 0 : i64, tpu.core_type = #tpu.core_type<tc>, window_params = [{transform_indices = @transform_0, window_bounds = array<i64: 4, 32>}, {pipeline_mode = #tpu.pipeline_mode<synchronous>, transform_indices = @transform_1, window_bounds = array<i64: 24, 56>}, {pipeline_mode = #tpu.pipeline_mode<synchronous>, transform_indices = @transform_2, window_bounds = array<i64: 24, 1>}, {pipeline_mode = #tpu.pipeline_mode<synchronous>, transform_indices = @transform_3, window_bounds = array<i64: 24, 1>}, {transform_indices = @transform_4, window_bounds = array<i64: 24, 32>}]} {
    %c0 = arith.constant 0 : index
    %c0_0 = arith.constant 0 : index
    %0 = vector.load %arg1[%c0, %c0_0] : memref<4x32xf32, #tpu.memory_space<vmem>>, vector<4x32xf32>
    %c0_1 = arith.constant 0 : index
    %c0_2 = arith.constant 0 : index
    %1 = vector.load %arg2[%c0_1, %c0_2] : memref<24x56xf32, #tpu.memory_space<vmem>>, vector<24x56xf32>
    %cst = arith.constant 0.000000e+00 : f32
    %2 = vector.broadcast %cst : f32 to vector<4x32xf32>
    %3 = tpu.concatenate %0, %2 in 0 : vector<4x32xf32>, vector<4x32xf32> -> vector<8x32xf32>
    %4 = tpu.iota {dimensions = array<i32: 1>} : vector<1x32xi32>
    %c16_i32 = arith.constant 16 : i32
    %c0_i32 = arith.constant 0 : i32
    %5 = arith.cmpi eq, %c16_i32, %c0_i32 : i32
    %c1_i32 = arith.constant 1 : i32
    %6 = arith.select %5, %c1_i32, %c16_i32 : i32
    %7 = vector.broadcast %6 : i32 to vector<1x32xi32>
    %8 = arith.remsi %4, %7 : vector<1x32xi32>
    %c0_i32_3 = arith.constant 0 : i32
    %9 = vector.broadcast %c0_i32_3 : i32 to vector<1x32xi32>
    %10 = arith.cmpi ne, %8, %9 : vector<1x32xi32>
    %c0_i32_4 = arith.constant 0 : i32
    %11 = vector.broadcast %c0_i32_4 : i32 to vector<1x32xi32>
    %12 = arith.cmpi slt, %8, %11 : vector<1x32xi32>
    %c0_i32_5 = arith.constant 0 : i32
    %13 = arith.cmpi slt, %6, %c0_i32_5 : i32
    %14 = vector.broadcast %13 : i1 to vector<1x32xi1>
    %15 = vector.broadcast %14 : vector<1x32xi1> to vector<1x32xi1>
    %16 = arith.xori %12, %15 : vector<1x32xi1>
    %17 = arith.andi %16, %10 : vector<1x32xi1>
    %18 = vector.broadcast %6 : i32 to vector<1x32xi32>
    %19 = arith.addi %8, %18 : vector<1x32xi32>
    %20 = arith.select %17, %19, %8 : vector<1x32xi1>, vector<1x32xi32>
    %21 = vector.extract_strided_slice %3 {offsets = [0, 29], sizes = [8, 3], strides = [1, 1]} : vector<8x32xf32> to vector<8x3xf32>
    %22 = vector.extract_strided_slice %3 {offsets = [0, 0], sizes = [8, 29], strides = [1, 1]} : vector<8x32xf32> to vector<8x29xf32>
    %23 = tpu.concatenate %21, %22 in 1 : vector<8x3xf32>, vector<8x29xf32> -> vector<8x32xf32>
    %c3_i32 = arith.constant 3 : i32
    %24 = vector.broadcast %c3_i32 : i32 to vector<1x32xi32>
    %25 = arith.cmpi sge, %20, %24 : vector<1x32xi32>
    %c16_i32_6 = arith.constant 16 : i32
    %26 = vector.broadcast %c16_i32_6 : i32 to vector<1x32xi32>
    %27 = arith.cmpi slt, %20, %26 : vector<1x32xi32>
    %28 = arith.andi %25, %27 : vector<1x32xi1>
    %cst_7 = arith.constant 0.000000e+00 : f32
    %29 = vector.shape_cast %28 : vector<1x32xi1> to vector<1x32xi1>
    %30 = vector.broadcast %29 : vector<1x32xi1> to vector<8x32xi1>
    %31 = vector.broadcast %cst_7 : f32 to vector<8x32xf32>
    %32 = arith.select %30, %23, %31 : vector<8x32xi1>, vector<8x32xf32>
    %33 = vector.extract_strided_slice %3 {offsets = [0, 30], sizes = [8, 2], strides = [1, 1]} : vector<8x32xf32> to vector<8x2xf32>
    %34 = vector.extract_strided_slice %3 {offsets = [0, 0], sizes = [8, 30], strides = [1, 1]} : vector<8x32xf32> to vector<8x30xf32>
    %35 = tpu.concatenate %33, %34 in 1 : vector<8x2xf32>, vector<8x30xf32> -> vector<8x32xf32>
    %c2_i32 = arith.constant 2 : i32
    %36 = vector.broadcast %c2_i32 : i32 to vector<1x32xi32>
    %37 = arith.cmpi sge, %20, %36 : vector<1x32xi32>
    %c16_i32_8 = arith.constant 16 : i32
    %38 = vector.broadcast %c16_i32_8 : i32 to vector<1x32xi32>
    %39 = arith.cmpi slt, %20, %38 : vector<1x32xi32>
    %40 = arith.andi %37, %39 : vector<1x32xi1>
    %cst_9 = arith.constant 0.000000e+00 : f32
    %41 = vector.shape_cast %40 : vector<1x32xi1> to vector<1x32xi1>
    %42 = vector.broadcast %41 : vector<1x32xi1> to vector<8x32xi1>
    %43 = vector.broadcast %cst_9 : f32 to vector<8x32xf32>
    %44 = arith.select %42, %35, %43 : vector<8x32xi1>, vector<8x32xf32>
    %45 = vector.extract_strided_slice %3 {offsets = [0, 31], sizes = [8, 1], strides = [1, 1]} : vector<8x32xf32> to vector<8x1xf32>
    %46 = vector.extract_strided_slice %3 {offsets = [0, 0], sizes = [8, 31], strides = [1, 1]} : vector<8x32xf32> to vector<8x31xf32>
    %47 = tpu.concatenate %45, %46 in 1 : vector<8x1xf32>, vector<8x31xf32> -> vector<8x32xf32>
    %c1_i32_10 = arith.constant 1 : i32
    %48 = vector.broadcast %c1_i32_10 : i32 to vector<1x32xi32>
    %49 = arith.cmpi sge, %20, %48 : vector<1x32xi32>
    %c16_i32_11 = arith.constant 16 : i32
    %50 = vector.broadcast %c16_i32_11 : i32 to vector<1x32xi32>
    %51 = arith.cmpi slt, %20, %50 : vector<1x32xi32>
    %52 = arith.andi %49, %51 : vector<1x32xi1>
    %cst_12 = arith.constant 0.000000e+00 : f32
    %53 = vector.shape_cast %52 : vector<1x32xi1> to vector<1x32xi1>
    %54 = vector.broadcast %53 : vector<1x32xi1> to vector<8x32xi1>
    %55 = vector.broadcast %cst_12 : f32 to vector<8x32xf32>
    %56 = arith.select %54, %47, %55 : vector<8x32xi1>, vector<8x32xf32>
    %57 = vector.extract_strided_slice %3 {offsets = [0, 1], sizes = [8, 31], strides = [1, 1]} : vector<8x32xf32> to vector<8x31xf32>
    %58 = vector.extract_strided_slice %3 {offsets = [0, 0], sizes = [8, 1], strides = [1, 1]} : vector<8x32xf32> to vector<8x1xf32>
    %59 = tpu.concatenate %57, %58 in 1 : vector<8x31xf32>, vector<8x1xf32> -> vector<8x32xf32>
    %c0_i32_13 = arith.constant 0 : i32
    %60 = vector.broadcast %c0_i32_13 : i32 to vector<1x32xi32>
    %61 = arith.cmpi sge, %20, %60 : vector<1x32xi32>
    %c15_i32 = arith.constant 15 : i32
    %62 = vector.broadcast %c15_i32 : i32 to vector<1x32xi32>
    %63 = arith.cmpi slt, %20, %62 : vector<1x32xi32>
    %64 = arith.andi %61, %63 : vector<1x32xi1>
    %cst_14 = arith.constant 0.000000e+00 : f32
    %65 = vector.shape_cast %64 : vector<1x32xi1> to vector<1x32xi1>
    %66 = vector.broadcast %65 : vector<1x32xi1> to vector<8x32xi1>
    %67 = vector.broadcast %cst_14 : f32 to vector<8x32xf32>
    %68 = arith.select %66, %59, %67 : vector<8x32xi1>, vector<8x32xf32>
    %69 = vector.extract_strided_slice %3 {offsets = [0, 2], sizes = [8, 30], strides = [1, 1]} : vector<8x32xf32> to vector<8x30xf32>
    %70 = vector.extract_strided_slice %3 {offsets = [0, 0], sizes = [8, 2], strides = [1, 1]} : vector<8x32xf32> to vector<8x2xf32>
    %71 = tpu.concatenate %69, %70 in 1 : vector<8x30xf32>, vector<8x2xf32> -> vector<8x32xf32>
    %c0_i32_15 = arith.constant 0 : i32
    %72 = vector.broadcast %c0_i32_15 : i32 to vector<1x32xi32>
    %73 = arith.cmpi sge, %20, %72 : vector<1x32xi32>
    %c14_i32 = arith.constant 14 : i32
    %74 = vector.broadcast %c14_i32 : i32 to vector<1x32xi32>
    %75 = arith.cmpi slt, %20, %74 : vector<1x32xi32>
    %76 = arith.andi %73, %75 : vector<1x32xi1>
    %cst_16 = arith.constant 0.000000e+00 : f32
    %77 = vector.shape_cast %76 : vector<1x32xi1> to vector<1x32xi1>
    %78 = vector.broadcast %77 : vector<1x32xi1> to vector<8x32xi1>
    %79 = vector.broadcast %cst_16 : f32 to vector<8x32xf32>
    %80 = arith.select %78, %71, %79 : vector<8x32xi1>, vector<8x32xf32>
    %81 = vector.extract_strided_slice %3 {offsets = [0, 3], sizes = [8, 29], strides = [1, 1]} : vector<8x32xf32> to vector<8x29xf32>
    %82 = vector.extract_strided_slice %3 {offsets = [0, 0], sizes = [8, 3], strides = [1, 1]} : vector<8x32xf32> to vector<8x3xf32>
    %83 = tpu.concatenate %81, %82 in 1 : vector<8x29xf32>, vector<8x3xf32> -> vector<8x32xf32>
    %c0_i32_17 = arith.constant 0 : i32
    %84 = vector.broadcast %c0_i32_17 : i32 to vector<1x32xi32>
    %85 = arith.cmpi sge, %20, %84 : vector<1x32xi32>
    %c13_i32 = arith.constant 13 : i32
    %86 = vector.broadcast %c13_i32 : i32 to vector<1x32xi32>
    %87 = arith.cmpi slt, %20, %86 : vector<1x32xi32>
    %88 = arith.andi %85, %87 : vector<1x32xi1>
    %cst_18 = arith.constant 0.000000e+00 : f32
    %89 = vector.shape_cast %88 : vector<1x32xi1> to vector<1x32xi1>
    %90 = vector.broadcast %89 : vector<1x32xi1> to vector<8x32xi1>
    %91 = vector.broadcast %cst_18 : f32 to vector<8x32xf32>
    %92 = arith.select %90, %83, %91 : vector<8x32xi1>, vector<8x32xf32>
    %93 = tpu.concatenate %32, %44, %56, %3, %68, %80, %92 in 0 : vector<8x32xf32>, vector<8x32xf32>, vector<8x32xf32>, vector<8x32xf32>, vector<8x32xf32>, vector<8x32xf32>, vector<8x32xf32> -> vector<56x32xf32>
    %cst_19 = arith.constant dense<0.000000e+00> : vector<24x32xf32>
    %94 = tpu.matmul %1, %93, %cst_19 {dimension_numbers = #tpu.dot_dimension_numbers<[1], [0], [0], [1], [0, 0, 1, 1], [], []>} : vector<24x56xf32>, vector<56x32xf32>, vector<24x32xf32> -> vector<24x32xf32>
    %c0_20 = arith.constant 0 : index
    %c0_21 = arith.constant 0 : index
    %95 = vector.load %arg3[%c0_20, %c0_21] : memref<24x1xf32, #tpu.memory_space<vmem>>, vector<24x1xf32>
    %96 = vector.broadcast %95 : vector<24x1xf32> to vector<24x32xf32>
    %97 = arith.mulf %94, %96 : vector<24x32xf32>
    %c0_22 = arith.constant 0 : index
    %c0_23 = arith.constant 0 : index
    %98 = vector.load %arg4[%c0_22, %c0_23] : memref<24x1xf32, #tpu.memory_space<vmem>>, vector<24x1xf32>
    %99 = vector.broadcast %98 : vector<24x1xf32> to vector<24x32xf32>
    %100 = arith.addf %97, %99 : vector<24x32xf32>
    %cst_24 = arith.constant 0.000000e+00 : f32
    %101 = vector.broadcast %cst_24 : f32 to vector<24x32xf32>
    %102 = arith.maximumf %100, %101 : vector<24x32xf32>
    %c0_25 = arith.constant 0 : index
    %c0_26 = arith.constant 0 : index
    %103 = vector.load %arg5[%c0_25, %c0_26] : memref<24x32xf32, #tpu.memory_space<vmem>>, vector<24x32xf32>
    tpu.vector_store %arg5[%c0_25, %c0_26], %102 {strides = array<i32>} : memref<24x32xf32, #tpu.memory_space<vmem>>, vector<24x32xf32>,
    return
  }
  func.func @transform_0(%arg0: i32) -> (i32, i32) {
    %c0_i32 = arith.constant 0 : i32
    %c0_i32_0 = arith.constant 0 : i32
    return %c0_i32, %arg0 : i32, i32
  }
  func.func @transform_1(%arg0: i32) -> (i32, i32) {
    %c0_i32 = arith.constant 0 : i32
    %c0_i32_0 = arith.constant 0 : i32
    %c0_i32_1 = arith.constant 0 : i32
    return %c0_i32, %c0_i32_0 : i32, i32
  }
  func.func @transform_2(%arg0: i32) -> (i32, i32) {
    %c0_i32 = arith.constant 0 : i32
    %c0_i32_0 = arith.constant 0 : i32
    %c0_i32_1 = arith.constant 0 : i32
    return %c0_i32, %c0_i32_0 : i32, i32
  }
  func.func @transform_3(%arg0: i32) -> (i32, i32) {
    %c0_i32 = arith.constant 0 : i32
    %c0_i32_0 = arith.constant 0 : i32
    %c0_i32_1 = arith.constant 0 : i32
    return %c0_i32, %c0_i32_0 : i32, i32
  }
  func.func @transform_4(%arg0: i32) -> (i32, i32) {
    %c0_i32 = arith.constant 0 : i32
    %c0_i32_0 = arith.constant 0 : i32
    return %c0_i32, %arg0 : i32, i32
  }
}

</mosaic_0001>

<bundles_post_ra>
// kernel: os_cnn_layer_forward.2
= control target key start
LH: loop header
LB: loop body
LE: loop exit
PB: predicated region body
PF: predicated region fallthrough
CT: control target
= control target key end

     0   :  { %vm17_vm0 = vcmask 1043456   ;;  %s228_s14 = smov 126   ;;  %s229_s15 = smov 125   ;;  %v19_v3 = vlaneseq  ;;  %vm107_vm1 = vcmask 236544   ;;  %vm94_vm3 = vcmask 244736   ;;  %s307_s0 = inlined_call_operand.vmem [shape: f32[4,32], index: 0, kind: input, shape index: {}]   ;;  %s308_s1 = inlined_call_operand.vmem [shape: f32[24,56], index: 1, kind: input, shape index: {}]   ;;  %s309_s2 = inlined_call_operand.vmem [shape: f32[1,24,1], index: 2, kind: output, shape index: {0}]   ;;  %s310_s3 = inlined_call_operand.vmem [shape: f32[1,24,1], index: 3, kind: output, shape index: {1}]  }
   0x1   :  { %v13_v0 = vld [vmem:[%s307_s0] sm:$0xf]  ;;  %s230_s16 = smov 127   ;;  %s231_s17 = smov 30   ;;  %vm80_vm5 = vcmask 252928   ;;  %vm67_vm7 = vcmask 7168  }
   0x2   :  { %v18_v1 = vsel %vm17_vm0, %v13_v0, 0.0  ;;  %s232_s18 = smov 29   ;;  %s233_s19 = smov 31   ;;  %v20_v4 = vand.u32 127, %v19_v3  ;;  %vm54_vm9 = vcmask 15360   ;;  %vm40_vm10 = vcmask 23552  }
   0x3   :  { %88 = vrot.lane.b32.xlu1 %v18_v1, %s228_s14  ;;  %101 = vrot.lane.b32.xlu0 %v18_v1, %s229_s15  ;;  %s234_s20 = smov 1   ;;  %s235_s21 = smov 97   ;;  %v14_v23 = vld [vmem:[%s308_s1] sm:$0xff]  ;;  %vm114_vm13 = vcmask 457728   ;;  %v15_v24 = vld [vmem:[%s308_s1 + $0x8] sm:$0xff]  ;;  %vm150_vm14 = vcmask 261120  }
   0x4   :  { %74 = vrot.lane.b32.xlu2 %v18_v1, %s230_s16  ;;  %s236_s22 = smov 98   ;;  %s237_s0 = smov 2   ;;  %v25_v7 = vand.u32 15, %v20_v4  ;;  %v16_v25 = vld [vmem:[%s308_s1 + $0x10] sm:$0xff] }
   0x5   :  { %s238_s23 = smov 99   ;;  %s239_s24 = smov 3  }
   0x6   :  { %vm109_vm2 = vcmp.lt.s32.totalorder %v25_v7, 13  ;;  %vm96_vm4 = vcmp.lt.s32.totalorder %v25_v7, 14  ;;  %vm83_vm6 = vcmp.lt.s32.totalorder %v25_v7, 15  ;;  %vm69_vm8 = vcmp.ge.s32.totalorder %v25_v7, 1 }
   0x7   :  { %vm56_vm11 = vcmp.ge.s32.totalorder %v25_v7, 2  ;;  %vm42_vm12 = vcmp.ge.s32.totalorder %v25_v7, 3 }
   0xb   :  { %91 = vrot.lane.b32.xlu1 %v18_v1, %s231_s17  ;;  %104 = vrot.lane.b32.xlu0 %v18_v1, %s232_s18 }
   0xc   :  { %77 = vrot.lane.b32.xlu2 %v18_v1, %s233_s19 }
  0x13   :  { %64 = vrot.lane.b32.xlu1 %v18_v1, %s234_s20  ;;  %61 = vrot.lane.b32.xlu0 %v18_v1, %s235_s21 }
  0x14   :  { %48 = vrot.lane.b32.xlu2 %v18_v1, %s236_s22 }
  0x1b   :  { %51 = vrot.lane.b32.xlu0 %v18_v1, %s237_s0  ;;  %34 = vrot.lane.b32.xlu1 %v18_v1, %s238_s23 }
  0x1c   :  { %37 = vrot.lane.b32.xlu2 %v18_v1, %s239_s24 }
  0x5e   :  { %v75_v2 = vpop.permute.xlu2 %74 }
  0x66   :  { %v78_v8 = vpop.permute.xlu2 %77 }
  0x67   :  { %v81_v14 = vsel %vm80_vm5, %v75_v2, %v78_v8 }
  0x6e   :  { %v49_v13 = vpop.permute.xlu2 %48 }
  0x75   :  { %v89_v5 = vpop.permute.xlu1 %88  ;;  %v102_v6 = vpop.permute.xlu0 %101 }
  0x76   :  { %v38_v18 = vpop.permute.xlu2 %37 }
  0x7d   :  { %v92_v9 = vpop.permute.xlu1 %91  ;;  %v105_v10 = vpop.permute.xlu0 %104 }
  0x7e   :  { %v108_v11 = vsel %vm107_vm1, %v102_v6, %v105_v10  ;;  %v95_v12 = vsel %vm94_vm3, %v89_v5, %v92_v9 }
  0x7f   :  { %192 = vmatpush.msk.msra.mxu0 %vm109_vm2, %v108_v11  ;;  %202 = vmatpush.msk.msra.mxu1 %vm109_vm2, %v108_v11 }
  0x80   :  { %203 = vmatpush.msk.msra.mxu2 %vm109_vm2, %v108_v11 }
  0x81   :  { %193 = vmatpush.msk.msra.mxu0 %vm96_vm4, %v95_v12  ;;  %204 = vmatpush.msk.msra.mxu1 %vm96_vm4, %v95_v12 }
  0x82   :  { %205 = vmatpush.msk.msra.mxu2 %vm96_vm4, %v95_v12 }
  0x83   :  { %194 = vmatpush.msk.msra.mxu0 %vm83_vm6, %v81_v14  ;;  %206 = vmatpush.msk.msra.mxu1 %vm83_vm6, %v81_v14 }
  0x84   :  { %207 = vmatpush.msk.msra.mxu2 %vm83_vm6, %v81_v14 }
  0x85   :  { %v65_v15 = vpop.permute.xlu1 %64  ;;  %195 = vmatpush.msk.msra.mxu0 %vm17_vm0, %v13_v0  ;;  %208 = vmatpush.msk.msra.mxu1 %vm17_vm0, %v13_v0  ;;  %v62_v16 = vpop.permute.xlu0 %61 }
  0x86   :  { %209 = vmatpush.msk.msra.mxu2 %vm17_vm0, %v13_v0  ;;  %v68_v17 = vsel %vm67_vm7, %v62_v16, %v65_v15 }
  0x87   :  { %196 = vmatpush.msk.msra.mxu0 %vm69_vm8, %v68_v17  ;;  %210 = vmatpush.msk.msra.mxu1 %vm69_vm8, %v68_v17 }
  0x88   :  { %211 = vmatpush.msk.msra.mxu2 %vm69_vm8, %v68_v17 }
  0x8d   :  { %v52_v19 = vpop.permute.xlu0 %51  ;;  %v35_v20 = vpop.permute.xlu1 %34 }
  0x8e   :  { %v55_v21 = vsel %vm54_vm9, %v49_v13, %v52_v19  ;;  %v41_v22 = vsel %vm40_vm10, %v35_v20, %v38_v18 }
  0x8f   :  { %197 = vmatpush.msk.msra.mxu0 %vm56_vm11, %v55_v21  ;;  %212 = vmatpush.msk.msra.mxu1 %vm56_vm11, %v55_v21 }
  0x90   :  { %213 = vmatpush.msk.msra.mxu2 %vm56_vm11, %v55_v21 }
  0x91   :  { %198 = vmatpush.msk.msra.mxu0 %vm42_vm12, %v41_v22  ;;  %214 = vmatpush.msk.msra.mxu1 %vm42_vm12, %v41_v22 }
  0x92   :  { %215 = vmatpush.msk.msra.mxu2 %vm42_vm12, %v41_v22  ;;  %199 = vmatmul.msk.f32.vlgmr.msra.gmra.mxu0 %vm114_vm13, %v14_v23 }
  0x93   :  { %200 = vmatmul.msk.f32.vlgmr.msra.gmra.mxu1 %vm114_vm13, %v15_v24  ;;  %201 = vmatmul.msk.f32.vlgmr.msra.gmra.mxu2 %vm114_vm13, %v16_v25 }
 0x10f   :  { %v141_v26 = vpop.f32.mrf.mxu0 }
 0x110   :  { %v144_v27 = vpop.f32.mrf.mxu1  ;;  %v151_v28 = vsel %vm150_vm14, %v141_v26, 0.0 }
 0x111   :  { %v154_v29 = vsel %vm150_vm14, %v144_v27, 0.0  ;;  %152 = vadd.xlane.f32.xlu0 %v151_v28 }
 0x112   :  { %155 = vadd.xlane.f32.xlu1 %v154_v29 }
 0x116   :  { %v147_v30 = vpop.f32.mrf.mxu2 }
 0x117   :  { %v157_v31 = vsel %vm150_vm14, %v147_v30, 0.0 }
 0x118   :  { %158 = vadd.xlane.f32.xlu2 %v157_v31 }
 0x184   :  { %v153_v32 = vpop.xlane.xlu0 %152 }
 0x185   :  { %v156_v33 = vpop.xlane.xlu1 %155  ;;  %v160_v34 = vmul.f32 0.03125, %v153_v32  ;;  %166 = vst.msk [vmem:[%s309_s2] sm:$0xff] %vm67_vm7, %v153_v32 }
 0x186   :  { %v161_v35 = vmul.f32 0.03125, %v156_v33  ;;  %167 = vst.msk [vmem:[%s309_s2 + $0x8] sm:$0xff] %vm67_vm7, %v156_v33 }
 0x187   :  { %v163_v36 = vsub.f32 %v141_v26, %v160_v34 }
 0x188   :  { %v164_v37 = vsub.f32 %v144_v27, %v161_v35 }
 0x189   :  { %v169_v38 = vmul.f32 %v163_v36, %v163_v36 }
 0x18a   :  { %v170_v39 = vmul.f32 %v164_v37, %v164_v37 }
 0x18b   :  { %v159_v40 = vpop.xlane.xlu2 %158  ;;  %v172_v41 = vsel %vm150_vm14, %v169_v38, 0.0 }
 0x18c   :  { %v162_v42 = vmul.f32 0.03125, %v159_v40  ;;  %168 = vst.msk [vmem:[%s309_s2 + $0x10] sm:$0xff] %vm67_vm7, %v159_v40  ;;  %v175_v43 = vsel %vm150_vm14, %v170_v39, 0.0  ;;  %173 = vadd.xlane.f32.xlu2 %v172_v41 }
 0x18d   :  { %176 = vadd.xlane.f32.xlu0 %v175_v43 }
 0x18e   :  { %v165_v44 = vsub.f32 %v147_v30, %v162_v42 }
 0x190   :  { %v171_v45 = vmul.f32 %v165_v44, %v165_v44 }
 0x192   :  { %v178_v46 = vsel %vm150_vm14, %v171_v45, 0.0 }
 0x193   :  { %179 = vadd.xlane.f32.xlu1 %v178_v46 }
 0x1ff   :  { %v174_v47 = vpop.xlane.xlu2 %173 }
 0x200   :  { %181 = vst.msk [vmem:[%s310_s3] sm:$0xff] %vm67_vm7, %v174_v47  ;;  %v177_v48 = vpop.xlane.xlu0 %176 }
 0x201   :  { %182 = vst.msk [vmem:[%s310_s3 + $0x8] sm:$0xff] %vm67_vm7, %v177_v48 }
 0x206   :  { %v180_v49 = vpop.xlane.xlu1 %179 }
 0x207   :  { %183 = vst.msk [vmem:[%s310_s3 + $0x10] sm:$0xff] %vm67_vm7, %v180_v49 }

// kernel: os_cnn_layer_forward.3
= control target key start
LH: loop header
LB: loop body
LE: loop exit
PB: predicated region body
PF: predicated region fallthrough
CT: control target
= control target key end

     0   :  { %vm21_vm0 = vcmask 1043456   ;;  %s247_s17 = smov 126   ;;  %s248_s18 = smov 125   ;;  %v23_v3 = vlaneseq  ;;  %v259_v7 = vmov 0   ;;  %vm111_vm1 = vcmask 236544   ;;  %s334_s0 = inlined_call_operand.vmem [shape: f32[4,32], index: 0, kind: input, shape index: {}]   ;;  %s335_s2 = inlined_call_operand.vmem [shape: f32[24,1], index: 2, kind: input, shape index: {}]   ;;  %s336_s3 = inlined_call_operand.vmem [shape: f32[24,1], index: 3, kind: input, shape index: {}]   ;;  %s337_s1 = inlined_call_operand.vmem [shape: f32[24,56], index: 1, kind: input, shape index: {}]   ;;  %s338_s4 = inlined_call_operand.vmem [shape: f32[24,32], index: 4, kind: output, shape index: {}]  }
   0x1   :  { %v288_v0 = vld [vmem:[%s334_s0] sm:$0xf]  ;;  %s249_s19 = smov 127   ;;  %s250_s20 = smov 30   ;;  %v155_v4 = vld [vmem:[%s335_s2 + $0x8] sm:$0xff]  ;;  %245 = vset.pattern.permute.xlu1 %v259_v7  ;;  %244 = vset.pattern.permute.xlu0 %v259_v7  ;;  %v156_v8 = vld [vmem:[%s335_s2 + $0x10] sm:$0xff] }
   0x2   :  { %v22_v1 = vsel %vm21_vm0, %v288_v0, 0.0  ;;  %s251_s21 = smov 29   ;;  %s252_s22 = smov 31   ;;  %v154_v5 = vld [vmem:[%s335_s2] sm:$0xff]  ;;  %v24_v6 = vand.u32 127, %v23_v3  ;;  %246 = vset.pattern.permute.xlu2 %v259_v7  ;;  %v177_v14 = vld [vmem:[%s336_s3 + $0x10] sm:$0xff] }
   0x3   :  { %92 = vrot.lane.b32.xlu1 %v22_v1, %s247_s17  ;;  %105 = vrot.lane.b32.xlu0 %v22_v1, %s248_s18  ;;  %s253_s23 = smov 1   ;;  %s254_s24 = smov 97   ;;  %v175_v13 = vld [vmem:[%s336_s3] sm:$0xff]  ;;  %vm98_vm3 = vcmask 244736   ;;  %v176_v17 = vld [vmem:[%s336_s3 + $0x8] sm:$0xff]  ;;  %vm84_vm5 = vcmask 252928  }
   0x4   :  { %78 = vrot.lane.b32.xlu2 %v22_v1, %s249_s19  ;;  %s255_s0 = smov 98   ;;  %s256_s25 = smov 2   ;;  %v29_v11 = vand.u32 15, %v24_v6  ;;  %vm71_vm7 = vcmask 7168   ;;  %vm58_vm9 = vcmask 15360   ;;  %vm44_vm10 = vcmask 23552  }
   0x5   :  { %s257_s26 = smov 99   ;;  %s258_s27 = smov 3   ;;  %v18_v30 = vld [vmem:[%s337_s1] sm:$0xff]  ;;  %vm118_vm13 = vcmask 457728   ;;  %v19_v31 = vld [vmem:[%s337_s1 + $0x8] sm:$0xff]  ;;  %v20_v32 = vld [vmem:[%s337_s1 + $0x10] sm:$0xff] }
   0x6   :  { %vm113_vm2 = vcmp.lt.s32.totalorder %v29_v11, 13  ;;  %vm100_vm4 = vcmp.lt.s32.totalorder %v29_v11, 14  ;;  %vm87_vm6 = vcmp.lt.s32.totalorder %v29_v11, 15  ;;  %vm73_vm8 = vcmp.ge.s32.totalorder %v29_v11, 1 }
   0x7   :  { %vm60_vm11 = vcmp.ge.s32.totalorder %v29_v11, 2  ;;  %vm46_vm12 = vcmp.ge.s32.totalorder %v29_v11, 3  ;;  %vm199_vm14 = vcmask 261120  }
   0xb   :  { %95 = vrot.lane.b32.xlu1 %v22_v1, %s250_s20  ;;  %108 = vrot.lane.b32.xlu0 %v22_v1, %s251_s21 }
   0xc   :  { %81 = vrot.lane.b32.xlu2 %v22_v1, %s252_s22 }
  0x13   :  { %68 = vrot.lane.b32.xlu1 %v22_v1, %s253_s23  ;;  %65 = vrot.lane.b32.xlu0 %v22_v1, %s254_s24 }
  0x14   :  { %52 = vrot.lane.b32.xlu2 %v22_v1, %s255_s0 }
  0x1b   :  { %55 = vrot.lane.b32.xlu0 %v22_v1, %s256_s25  ;;  %38 = vrot.lane.b32.xlu1 %v22_v1, %s257_s26 }
  0x1c   :  { %41 = vrot.lane.b32.xlu2 %v22_v1, %s258_s27 }
  0x23   :  { %164 = vperm.xlu1 %245, %v155_v4   ;;  %159 = vperm.xlu0 %244, %v154_v5  }
  0x24   :  { %169 = vperm.xlu2 %246, %v156_v8  }
  0x2b   :  { %180 = vperm.xlu1 %245, %v175_v13   ;;  %190 = vperm.xlu0 %244, %v177_v14  }
  0x2c   :  { %185 = vperm.xlu2 %246, %v176_v17  }
  0x5e   :  { %v79_v2 = vpop.permute.xlu2 %78 }
  0x66   :  { %v82_v12 = vpop.permute.xlu2 %81 }
  0x67   :  { %v85_v21 = vsel %vm84_vm5, %v79_v2, %v82_v12 }
  0x6e   :  { %v53_v20 = vpop.permute.xlu2 %52 }
  0x75   :  { %v93_v9 = vpop.permute.xlu1 %92  ;;  %v106_v10 = vpop.permute.xlu0 %105 }
  0x76   :  { %v42_v25 = vpop.permute.xlu2 %41 }
  0x7d   :  { %v96_v15 = vpop.permute.xlu1 %95  ;;  %v109_v16 = vpop.permute.xlu0 %108 }
  0x7e   :  { %v112_v18 = vsel %vm111_vm1, %v106_v10, %v109_v16  ;;  %v99_v19 = vsel %vm98_vm3, %v93_v9, %v96_v15  ;;  %v170_v34 = vpop.permute.xlu2 %169 }
  0x7f   :  { %207 = vmatpush.msk.msra.mxu0 %vm113_vm2, %v112_v18  ;;  %217 = vmatpush.msk.msra.mxu1 %vm113_vm2, %v112_v18 }
  0x80   :  { %218 = vmatpush.msk.msra.mxu2 %vm113_vm2, %v112_v18 }
  0x81   :  { %208 = vmatpush.msk.msra.mxu0 %vm100_vm4, %v99_v19  ;;  %219 = vmatpush.msk.msra.mxu1 %vm100_vm4, %v99_v19 }
  0x82   :  { %220 = vmatpush.msk.msra.mxu2 %vm100_vm4, %v99_v19 }
  0x83   :  { %209 = vmatpush.msk.msra.mxu0 %vm87_vm6, %v85_v21  ;;  %221 = vmatpush.msk.msra.mxu1 %vm87_vm6, %v85_v21 }
  0x84   :  { %222 = vmatpush.msk.msra.mxu2 %vm87_vm6, %v85_v21 }
  0x85   :  { %v69_v22 = vpop.permute.xlu1 %68  ;;  %210 = vmatpush.msk.msra.mxu0 %vm21_vm0, %v288_v0  ;;  %223 = vmatpush.msk.msra.mxu1 %vm21_vm0, %v288_v0  ;;  %v66_v23 = vpop.permute.xlu0 %65 }
  0x86   :  { %224 = vmatpush.msk.msra.mxu2 %vm21_vm0, %v288_v0  ;;  %v72_v24 = vsel %vm71_vm7, %v66_v23, %v69_v22  ;;  %v186_v41 = vpop.permute.xlu2 %185 }
  0x87   :  { %211 = vmatpush.msk.msra.mxu0 %vm73_vm8, %v72_v24  ;;  %225 = vmatpush.msk.msra.mxu1 %vm73_vm8, %v72_v24 }
  0x88   :  { %226 = vmatpush.msk.msra.mxu2 %vm73_vm8, %v72_v24 }
  0x8d   :  { %v56_v26 = vpop.permute.xlu0 %55  ;;  %v39_v27 = vpop.permute.xlu1 %38 }
  0x8e   :  { %v59_v28 = vsel %vm58_vm9, %v53_v20, %v56_v26  ;;  %v45_v29 = vsel %vm44_vm10, %v39_v27, %v42_v25 }
  0x8f   :  { %212 = vmatpush.msk.msra.mxu0 %vm60_vm11, %v59_v28  ;;  %227 = vmatpush.msk.msra.mxu1 %vm60_vm11, %v59_v28 }
  0x90   :  { %228 = vmatpush.msk.msra.mxu2 %vm60_vm11, %v59_v28 }
  0x91   :  { %213 = vmatpush.msk.msra.mxu0 %vm46_vm12, %v45_v29  ;;  %229 = vmatpush.msk.msra.mxu1 %vm46_vm12, %v45_v29 }
  0x92   :  { %230 = vmatpush.msk.msra.mxu2 %vm46_vm12, %v45_v29  ;;  %214 = vmatmul.msk.f32.vlgmr.msra.gmra.mxu0 %vm118_vm13, %v18_v30 }
  0x93   :  { %215 = vmatmul.msk.f32.vlgmr.msra.gmra.mxu1 %vm118_vm13, %v19_v31  ;;  %216 = vmatmul.msk.f32.vlgmr.msra.gmra.mxu2 %vm118_vm13, %v20_v32 }
  0x95   :  { %v165_v33 = vpop.permute.xlu1 %164  ;;  %v160_v35 = vpop.permute.xlu0 %159 }
  0x9d   :  { %v181_v39 = vpop.permute.xlu1 %180  ;;  %v191_v48 = vpop.permute.xlu0 %190 }
 0x10f   :  { %v145_v36 = vpop.f32.mrf.mxu0 }
 0x110   :  { %v172_v37 = vmul.f32 %v160_v35, %v145_v36  ;;  %v148_v38 = vpop.f32.mrf.mxu1 }
 0x111   :  { %v173_v40 = vmul.f32 %v165_v33, %v148_v38 }
 0x112   :  { %v193_v42 = vadd.f32 %v181_v39, %v172_v37 }
 0x113   :  { %v194_v43 = vadd.f32 %v186_v41, %v173_v40 }
 0x114   :  { %v196_v44 = vmax.f32 %v193_v42, 0.0 }
 0x115   :  { %v197_v45 = vmax.f32 %v194_v43, 0.0 }
 0x116   :  { %200 = vst.msk [vmem:[%s338_s4] sm:$0xff] %vm199_vm14, %v196_v44  ;;  %v151_v46 = vpop.f32.mrf.mxu2 }
 0x117   :  { %201 = vst.msk [vmem:[%s338_s4 + $0x8] sm:$0xff] %vm199_vm14, %v197_v45  ;;  %v174_v47 = vmul.f32 %v170_v34, %v151_v46 }
 0x119   :  { %v195_v49 = vadd.f32 %v191_v48, %v174_v47 }
 0x11b   :  { %v198_v50 = vmax.f32 %v195_v49, 0.0 }
 0x11d   :  { %202 = vst.msk [vmem:[%s338_s4 + $0x10] sm:$0xff] %vm199_vm14, %v198_v50 }

</bundles_post_ra>
